<compile_context>
chip_gen: v7x
topology: tpu7x:2x2x1
jax: 0.10.0
libtpu: 0.0.40
codegen_flags: <defaults>
</compile_context>

<pallas_src>
import functools

import jax
import jax.numpy as jnp
from jax.experimental import pallas as pl
from jax.experimental.pallas import tpu as pltpu


def _nce_kernel(pred_ref, labels_ref, out_ref, *, num_classes, tile_n, n_valid,
                mask_rows):
    x = pred_ref[...].astype(jnp.float32)                   # (tn, C)
    labels = labels_ref[...]                                 # (tn, 1) int32

    # log-sum-exp over the class (lane) axis, kept as (tn, 1)
    m = jnp.max(x, axis=1, keepdims=True)                    # (tn, 1)
    shifted = x - m                                           # (tn, C)
    sumexp = jnp.sum(jnp.exp(shifted), axis=1, keepdims=True)
    logsumexp = jnp.log(sumexp) + m                           # (tn, 1)

    sum_x = jnp.sum(x, axis=1, keepdims=True)                 # (tn, 1)

    # selected logit x[i, label_i] via iota compare + select (no gather,
    # no int->float convert, no full-tile multiply)
    cls = jax.lax.broadcasted_iota(jnp.int32, x.shape, 1)
    sel = jnp.sum(jnp.where(cls == labels, x, 0.0), axis=1, keepdims=True)

    num = logsumexp - sel                                     # -logp[label]
    den = num_classes * logsumexp - sum_x                     # -sum(logp)
    nce = num / den                                           # (tn, 1)

    if mask_rows:
        # zero the contribution of padded rows (only the last tile has any;
        # the predicate is trivially true elsewhere and the select is cheap).
        row = (pl.program_id(0) * tile_n
               + jax.lax.broadcasted_iota(jnp.int32, nce.shape, 0))
        nce = jnp.where(row < n_valid, nce, 0.0)

    partial = jnp.sum(nce)                                    # scalar
    # One lane-dense, unmasked store per tile (value replicated in the block).
    out_ref[...] = jnp.broadcast_to(partial, out_ref.shape)


def _choose_tile_n(n, c, vmem_budget_bytes=32 * 1024 * 1024):
    """Largest row tile (multiple of 8) whose working set fits the budget.

    Budget ~ 2x double-buffered pred block + ~6 live (tile_n, C) f32
    temporaries inside the body => ~8 * tile_n * C * 4 bytes.
    """
    bytes_per_row = 8 * c * 4
    tile = vmem_budget_bytes // max(bytes_per_row, 1)
    tile = min(tile, 2048)
    tile = max((tile // 8) * 8, 8)
    n_pad8 = ((n + 7) // 8) * 8
    return min(tile, n_pad8)


def normalized_cross_entropy(pred, labels, num_classes, scale=1.0, tile_n=None):
    """pred: (N, C) float (f32 or bf16), labels: (N,) int.  Returns scalar f32."""
    n, c = pred.shape
    assert c == num_classes

    if tile_n is None:
        tile_n = _choose_tile_n(n, c)
    assert tile_n % 8 == 0

    num_tiles = (n + tile_n - 1) // tile_n
    n_pad = num_tiles * tile_n
    if n_pad != n:
        # Padded rows are zeros; their nce would be finite (1/C) and is masked
        # to zero inside the kernel.
        pred = jnp.pad(pred, ((0, n_pad - n), (0, 0)))
        labels = jnp.pad(labels, (0, n_pad - n))
    labels2d = labels.reshape(n_pad, 1).astype(jnp.int32)

    kernel = functools.partial(
        _nce_kernel,
        num_classes=float(num_classes),
        tile_n=tile_n,
        n_valid=n,
        mask_rows=(n_pad != n),
    )

    partials = pl.pallas_call(
        kernel,
        out_shape=jax.ShapeDtypeStruct((num_tiles, 8, 128), jnp.float32),
        grid_spec=pltpu.PrefetchScalarGridSpec(
            num_scalar_prefetch=0,
            grid=(num_tiles,),
            in_specs=[
                pl.BlockSpec((tile_n, c), lambda i: (i, 0)),
                pl.BlockSpec((tile_n, 1), lambda i: (i, 0)),
            ],
            out_specs=pl.BlockSpec((1, 8, 128), lambda i: (i, 0, 0)),
        ),
        compiler_params=pltpu.CompilerParams(
            dimension_semantics=("parallel",),        # no cross-step accumulator
            vmem_limit_bytes=48 * 1024 * 1024,        # safe on v5e/v6e/v7x
        ),
    )(pred, labels2d)

    return scale * jnp.sum(partials[:, 0, 0]) / n


def _reference(pred, labels, num_classes, scale=1.0):
    logp = jax.nn.log_softmax(pred.astype(jnp.float32), axis=1)
    onehot = jax.nn.one_hot(labels, num_classes, dtype=jnp.float32)
    nce = -jnp.sum(onehot * logp, axis=1) / (-jnp.sum(logp, axis=1))
    return scale * jnp.mean(nce)


if __name__ == "__main__":
    key = jax.random.PRNGKey(0)
    C = 32
    scale = 1.0

    kp, kl, kp2, kl2, kp3, kl3 = jax.random.split(key, 6)

    # Case 1: N divisible by the tile
    N1 = 16
    pred1 = jax.random.normal(kp, (N1, C), dtype=jnp.float32)
    labels1 = jax.random.randint(kl, (N1,), 0, C, dtype=jnp.int32)
    out1 = jax.block_until_ready(
        normalized_cross_entropy(pred1, labels1, num_classes=C, scale=scale))
    ref1 = _reference(pred1, labels1, C, scale)
    assert jnp.allclose(out1, ref1, atol=1e-5, rtol=1e-5), (out1, ref1)

    # Case 2: N not divisible by 8 (exercises the row-padding / masking path)
    N2 = 13
    pred2 = jax.random.normal(kp2, (N2, C), dtype=jnp.float32)
    labels2 = jax.random.randint(kl2, (N2,), 0, C, dtype=jnp.int32)
    out2 = jax.block_until_ready(
        normalized_cross_entropy(pred2, labels2, num_classes=C, scale=scale))
    ref2 = _reference(pred2, labels2, C, scale)
    assert jnp.allclose(out2, ref2, atol=1e-5, rtol=1e-5), (out2, ref2)

    # Case 3: multiple tiles + padding on the last tile (forced small tile)
    N3 = 300
    pred3 = jax.random.normal(kp3, (N3, C), dtype=jnp.float32)
    labels3 = jax.random.randint(kl3, (N3,), 0, C, dtype=jnp.int32)
    out3 = jax.block_until_ready(
        normalized_cross_entropy(pred3, labels3, num_classes=C, scale=scale,
                                 tile_n=64))
    ref3 = _reference(pred3, labels3, C, scale)
    assert jnp.allclose(out3, ref3, atol=1e-5, rtol=1e-5), (out3, ref3)

    print("KERNEL_OK")
</pallas_src>

<mosaic_0001>
module attributes {stable_mosaic.version = 11 : i64} {
  func.func @_nce_kernel(%arg0: i32, %arg1: memref<16x32xf32, #tpu.memory_space<vmem>>, %arg2: memref<16x1xi32, #tpu.memory_space<vmem>>, %arg3: memref<1x8x128xf32, #tpu.memory_space<vmem>>) attributes {dimension_semantics = [#tpu.dimension_semantics<parallel>], iteration_bounds = array<i64: 1>, scalar_prefetch = 0 : i64, scratch_operands = 0 : i64, tpu.core_type = #tpu.core_type<tc>, window_params = [{transform_indices = @transform_0, window_bounds = array<i64: 16, 32>}, {transform_indices = @transform_1, window_bounds = array<i64: 16, 1>}, {transform_indices = @transform_2, window_bounds = array<i64: 1, 8, 128>}]} {
    %c0 = arith.constant 0 : index
    %c0_0 = arith.constant 0 : index
    %0 = vector.load %arg1[%c0, %c0_0] : memref<16x32xf32, #tpu.memory_space<vmem>>, vector<16x32xf32>
    %c0_1 = arith.constant 0 : index
    %c0_2 = arith.constant 0 : index
    %1 = vector.load %arg2[%c0_1, %c0_2] : memref<16x1xi32, #tpu.memory_space<vmem>>, vector<16x1xi32>
    %cst = arith.constant dense<0xFF800000> : vector<16xf32>
    %2 = vector.multi_reduction <maximumf>, %0, %cst [1] : vector<16x32xf32> to vector<16xf32>
    %3 = vector.shape_cast %2 : vector<16xf32> to vector<16x1xf32>
    %4 = vector.broadcast %3 : vector<16x1xf32> to vector<16x32xf32>
    %5 = arith.subf %0, %4 : vector<16x32xf32>
    %6 = math.exp %5 : vector<16x32xf32>
    %cst_3 = arith.constant dense<0.000000e+00> : vector<16xf32>
    %7 = vector.multi_reduction <add>, %6, %cst_3 [1] : vector<16x32xf32> to vector<16xf32>
    %8 = vector.shape_cast %7 : vector<16xf32> to vector<16x1xf32>
    %9 = math.log %8 : vector<16x1xf32>
    %10 = arith.addf %9, %3 : vector<16x1xf32>
    %cst_4 = arith.constant dense<0.000000e+00> : vector<16xf32>
    %11 = vector.multi_reduction <add>, %0, %cst_4 [1] : vector<16x32xf32> to vector<16xf32>
    %12 = vector.shape_cast %11 : vector<16xf32> to vector<16x1xf32>
    %13 = tpu.iota {dimensions = array<i32: 1>} : vector<16x32xi32>
    %14 = vector.broadcast %1 : vector<16x1xi32> to vector<16x32xi32>
    %15 = arith.cmpi eq, %13, %14 : vector<16x32xi32>
    %cst_5 = arith.constant 0.000000e+00 : f32
    %16 = vector.broadcast %cst_5 : f32 to vector<16x32xf32>
    %17 = arith.select %15, %0, %16 : vector<16x32xi1>, vector<16x32xf32>
    %cst_6 = arith.constant dense<0.000000e+00> : vector<16xf32>
    %18 = vector.multi_reduction <add>, %17, %cst_6 [1] : vector<16x32xf32> to vector<16xf32>
    %19 = vector.shape_cast %18 : vector<16xf32> to vector<16x1xf32>
    %20 = arith.subf %10, %19 : vector<16x1xf32>
    %cst_7 = arith.constant 3.200000e+01 : f32
    %21 = vector.broadcast %cst_7 : f32 to vector<16x1xf32>
    %22 = arith.mulf %21, %10 : vector<16x1xf32>
    %23 = arith.subf %22, %12 : vector<16x1xf32>
    %24 = arith.divf %20, %23 : vector<16x1xf32>
    %25 = vector.shape_cast %24 : vector<16x1xf32> to vector<1x16x1xf32>
    %cst_8 = arith.constant dense<0.000000e+00> : vector<1xf32>
    %26 = vector.multi_reduction <add>, %25, %cst_8 [1, 2] : vector<1x16x1xf32> to vector<1xf32>
    %27 = vector.shape_cast %26 : vector<1xf32> to vector<1x1x1xf32>
    %28 = vector.extract %27[0, 0, 0] : f32 from vector<1x1x1xf32>
    %29 = vector.broadcast %28 : f32 to vector<1x8x128xf32>
    %c0_9 = arith.constant 0 : index
    %c0_10 = arith.constant 0 : index
    %c0_11 = arith.constant 0 : index
    %30 = vector.load %arg3[%c0_9, %c0_10, %c0_11] : memref<1x8x128xf32, #tpu.memory_space<vmem>>, vector<1x8x128xf32>
    tpu.vector_store %arg3[%c0_9, %c0_10, %c0_11], %29 {strides = array<i32>} : memref<1x8x128xf32, #tpu.memory_space<vmem>>, vector<1x8x128xf32>,
    return
  }
  func.func @transform_0(%arg0: i32) -> (i32, i32) {
    %c0_i32 = arith.constant 0 : i32
    %c0_i32_0 = arith.constant 0 : i32
    return %arg0, %c0_i32 : i32, i32
  }
  func.func @transform_1(%arg0: i32) -> (i32, i32) {
    %c0_i32 = arith.constant 0 : i32
    %c0_i32_0 = arith.constant 0 : i32
    return %arg0, %c0_i32 : i32, i32
  }
  func.func @transform_2(%arg0: i32) -> (i32, i32, i32) {
    %c0_i32 = arith.constant 0 : i32
    %c0_i32_0 = arith.constant 0 : i32
    %c0_i32_1 = arith.constant 0 : i32
    return %arg0, %c0_i32, %c0_i32_0 : i32, i32, i32
  }
}

</mosaic_0001>

<bundles_post_ra>
// kernel: tpu_custom_call.1
= control target key start
LH: loop header
LB: loop body
LE: loop exit
PB: predicated region body
PF: predicated region fallthrough
CT: control target
= control target key end

     0   :  { %vm16_vm0 = vcmask 261120   ;;  %v146_v4 = vmov 0   ;;  %s195_s0 = inlined_call_operand.vmem [shape: f32[16,32], index: 0, kind: input, shape index: {}]   ;;  %s196_s1 = inlined_call_operand.vmem [shape: s32[16,1], index: 1, kind: input, shape index: {}]   ;;  %s197_s2 = inlined_call_operand.hbm [shape: f32[1,8,128], index: 2, kind: output, shape index: {}]  }
   0x1   :  { %v12_v0 = vld [vmem:[%s195_s0] sm:$0xff]  ;;  %v13_v1 = vld [vmem:[%s195_s0 + $0x8] sm:$0xff]  ;;  %108 = vset.pattern.permute.xlu1 %v146_v4  ;;  %109 = vset.pattern.permute.xlu0 %v146_v4 }
   0x2   :  { %v14_v2 = vld [vmem:[%s196_s1] sm:$0xff]  ;;  %v17_v3 = vsel %vm16_vm0, %v12_v0, -inf }
   0x3   :  { %7 = vsyncpa [#allocation3], 0  ;;  %18 = vmax.xlane.f32.xlu0 %v17_v3  ;;  %50 = vperm.xlu1 %108, %v14_v2   ;;  %v20_v5 = vsel %vm16_vm0, %v13_v1, -inf  ;;  %v15_v6 = vld [vmem:[%s196_s1 + $0x8] sm:$0xff]  ;;  %v47_v13 = vlaneseq  ;;  %v41_v18 = vsel %vm16_vm0, %v12_v0, 0.0  ;;  %v44_v22 = vsel %vm16_vm0, %v13_v1, 0.0 }
   0x4   :  { %vm75_vm3 = vcmask 7168   ;;  %s147_s0 = smov [#allocation2]  }
   0x5   :  { %v48_v17 = vand.u32 127, %v47_v13  ;;  %s96_s1 = sshll.u32 %s147_s0, 4  ;;  %s97_s1 = int_to_ptr.vmem [resolvable:$true] %s96_s1 }
   0x6   :  { %s122_s18 = scalar_lea.vmem %s97_s1, 128  ;;  %p127_p1 = scmp.lt.s32.totalorder %s97_s1, %s97_s1 }
   0x7   :  { %21 = vmax.xlane.f32.xlu0 %v20_v5  ;;  %53 = vperm.xlu1 %108, %v15_v6   ;;  %p123_p0 = scmp.ne.s32.totalorder %s97_s1, %s122_s18  ;;  %p128_p2 = scmp.lt.s32.totalorder %s122_s18, %s122_s18 }
   0x9   :  { %p129_p3 = por %p128_p2, %p127_p1 }
   0xb   :  { %p130_p4 = pnand %p129_p3, %p123_p0 }
  0x82   :  { %v51_v15 = vpop.permute.xlu1 %50 }
  0x83   :  { %vm55_vm1 = vcmp.eq.s32.totalorder %v48_v17, %v51_v15 }
  0x84   :  { %v57_v23 = vsel %vm55_vm1, %v12_v0, 0.0 }
  0x85   :  { %v59_v24 = vsel %vm16_vm0, %v57_v23, 0.0 }
  0x86   :  { %v54_v21 = vpop.permute.xlu1 %53 }
  0x87   :  { %vm56_vm2 = vcmp.eq.s32.totalorder %v48_v17, %v54_v21 }
  0x88   :  { %v58_v25 = vsel %vm56_vm2, %v13_v1, 0.0 }
  0x89   :  { %v62_v26 = vsel %vm16_vm0, %v58_v25, 0.0 }
  0x90   :  { %v19_v7 = vpop.xlane.xlu0 %18 }
  0x91   :  { %v23_v8 = vsub.f32 %v12_v0, %v19_v7 }
  0x93   :  { %v25_v9 = vmul.f32 1.442695, %v23_v8 }
  0x94   :  { %v22_v10 = vpop.xlane.xlu0 %21 }
  0x95   :  { %110 = vpow2.f32 %v25_v9  ;;  %v24_v11 = vsub.f32 %v13_v1, %v22_v10 }
  0x97   :  { %v27_v12 = vmul.f32 1.442695, %v24_v11 }
  0x99   :  { %112 = vpow2.f32 %v27_v12 }
  0x9f   :  { %v111_v14 = vpop.eup %110 }
  0xa0   :  { %v29_v16 = vsel %vm16_vm0, %v111_v14, 0.0 }
  0xa1   :  { %30 = vadd.xlane.f32.xlu0 %v29_v16 }
  0xa3   :  { %v113_v19 = vpop.eup %112 }
  0xa4   :  { %v32_v20 = vsel %vm16_vm0, %v113_v19, 0.0 }
  0xa5   :  { %33 = vadd.xlane.f32.xlu1 %v32_v20  ;;  %42 = vadd.xlane.f32.xlu0 %v41_v18 }
  0xa9   :  { %45 = vadd.xlane.f32.xlu0 %v44_v22 }
  0xad   :  { %60 = vadd.xlane.f32.xlu0 %v59_v24 }
  0xb1   :  { %63 = vadd.xlane.f32.xlu0 %v62_v26 }
 0x12e   :  { %v31_v27 = vpop.xlane.xlu0 %30 }
 0x12f   :  { %114 = vlog2.f32 %v31_v27 }
 0x132   :  { %v34_v28 = vpop.xlane.xlu1 %33  ;;  %v43_v31 = vpop.xlane.xlu0 %42 }
 0x133   :  { %116 = vlog2.f32 %v34_v28 }
 0x136   :  { %v46_v38 = vpop.xlane.xlu0 %45 }
 0x139   :  { %v115_v29 = vpop.eup %114 }
 0x13a   :  { %v36_v30 = vmul.f32 0.6931472, %v115_v29  ;;  %v61_v41 = vpop.xlane.xlu0 %60 }
 0x13c   :  { %v39_v32 = vadd.f32 %v36_v30, %v19_v7 }
 0x13d   :  { %v117_v33 = vpop.eup %116 }
 0x13e   :  { %v38_v34 = vmul.f32 0.6931472, %v117_v33  ;;  %v67_v35 = vmul.f32 32.0, %v39_v32  ;;  %v64_v43 = vpop.xlane.xlu0 %63  ;;  %v65_v44 = vsub.f32 %v39_v32, %v61_v41 }
 0x140   :  { %v69_v36 = vsub.f32 %v67_v35, %v43_v31  ;;  %v40_v37 = vadd.f32 %v38_v34, %v22_v10 }
 0x142   :  { %118 = vrcp.f32 %v69_v36  ;;  %v68_v39 = vmul.f32 32.0, %v40_v37  ;;  %v66_v46 = vsub.f32 %v40_v37, %v64_v43 }
 0x144   :  { %v70_v40 = vsub.f32 %v68_v39, %v46_v38 }
 0x146   :  { %120 = vrcp.f32 %v70_v40 }
 0x14c   :  { %v119_v42 = vpop.eup %118 }
 0x14d   :  { %v72_v45 = vmul.f32 %v119_v42, %v65_v44 }
 0x14f   :  { %v76_v49 = vsel %vm75_vm3, %v72_v45, 0.0 }
 0x150   :  { %v121_v47 = vpop.eup %120 }
 0x151   :  { %v74_v48 = vmul.f32 %v121_v47, %v66_v46 }
 0x153   :  { %v77_v50 = vsel %vm75_vm3, %v74_v48, 0.0 }
 0x154   :  { %v78_v51 = vadd.f32 %v77_v50, %v76_v49 }
 0x156   :  { %79 = vadd.xlane.f32.xlu0 %v78_v51 }
 0x1e3   :  { %v80_v52 = vpop.xlane.xlu0 %79 }
 0x1e4   :  { %v81_v53 = vrot.slane %v80_v52, 4 }
 0x1e6   :  { %v82_v54 = vadd.f32 %v81_v53, %v80_v52 }
 0x1e8   :  { %v83_v55 = vrot.slane %v82_v54, 2 }
 0x1ea   :  { %v84_v56 = vadd.f32 %v83_v55, %v82_v54 }
 0x1ec   :  { %v85_v57 = vrot.slane %v84_v56, 1 }
 0x1ee   :  { %v86_v58 = vadd.f32 %v85_v57, %v84_v56 }
 0x1f0   :  { %104 = vpush %v86_v58 }
 0x221   :  { %s105_s17 = spop %104 }
 0x222   :  { %v88_v59 = vstv %s105_s17 }
 0x223   :  { %89 = vst [vmem:[#allocation2] sm:$0xff] %v88_v59 }
 0x224   :  { %133 = shalt.err (!%p130_p4)
}
 0x225   :  { %s134_s21 = scalar_lea.hbm %s197_s2, 128 }
 0x226   :  { %p135_p5 = scmp.ne.s32.totalorder %s197_s2, %s134_s21  ;;  %p138_p6 = scmp.lt.u32.totalorder %s134_s21, %s197_s2 }
 0x228   :  { %p140_p7 = pnand %p138_p6, %p135_p5 }
 0x22a   :  { %143 = shalt.err (!%p140_p7)
}
 0x22b   :  { %99 = dma.vmem_to_hbm [thread:$0]  %s97_s1, 128, %s197_s2, [#allocation3]  }
 0x22c   :  { %144 = dma.done.wait [#allocation3], 128  }
 0x22d   :  { %145 = vsyncadd [#allocation3], 4294967168 }
 0x22e   :  { %103 = vsyncpa [#allocation3], 1 }

</bundles_post_ra>
